<compile_context>
chip_gen: v7x
topology: tpu7x:2x2x1
jax: 0.10.0
libtpu: 0.0.40
codegen_flags: <defaults>
</compile_context>

<pallas_src>
import functools

import jax
import jax.numpy as jnp
from jax import lax
from jax.experimental import pallas as pl
from jax.experimental.pallas import tpu as pltpu


def _round_up(v, m):
    return ((v + m - 1) // m) * m


def agenet_kernel(x_ref, w_ref, b_ref, o_ref, *, input_dim):
    # x_ref: (tb, D) batch tile in natural layout.
    # w_ref: (64, C) packed weight slab, rows = output features, cols = input features:
    #        rows  0:16 -> W1 (16, D), 16:48 -> W2 (32, 16), 48:56 -> W3 (8, 32),
    #        row  56    -> W4 (1, 8).
    # b_ref: (64, 1) packed bias column with the same row layout.
    x = x_ref[...].astype(jnp.float32)          # bf16 input upcast in VMEM (cheap VPU)

    w1 = w_ref[0:16, 0:input_dim]               # (16, D)
    w2 = w_ref[16:48, 0:16]                     # (32, 16)
    w3 = w_ref[48:56, 0:32]                     # (8, 32)
    w4 = w_ref[56:57, 0:8]                      # (1, 8)
    b1 = b_ref[0:16, :]                         # (16, 1)
    b2 = b_ref[16:48, :]                        # (32, 1)
    b3 = b_ref[48:56, :]                        # (8, 1)
    b4 = b_ref[56:57, :]                        # (1, 1)

    # Layer 1: Linear(D, 16) + ReLU — contract D directly (W1 @ x^T) so activations
    # stay batch-on-lanes: (16, tb).  Dropout(0.25) is identity in eval mode.
    h = lax.dot_general(w1, x, (((1,), (1,)), ((), ())),
                        preferred_element_type=jnp.float32) + b1
    h = jnp.maximum(h, 0.0)
    # Layer 2: Linear(16, 32) + ReLU.  Dropout(0.125) is identity in eval mode.
    h = jnp.dot(w2, h, preferred_element_type=jnp.float32) + b2
    h = jnp.maximum(h, 0.0)
    # Layer 3: Linear(32, 8) + ReLU.
    h = jnp.dot(w3, h, preferred_element_type=jnp.float32) + b3
    h = jnp.maximum(h, 0.0)
    # Layer 4: Linear(8, 1) -> lane-dense (1, tb) output tile.
    o_ref[...] = jnp.dot(w4, h, preferred_element_type=jnp.float32) + b4


def _pack_params(params, input_dim):
    """Pack the 8 tiny weight/bias tensors into two small resident slabs."""
    cols = _round_up(max(input_dim, 32), 128)
    w = jnp.zeros((64, cols), jnp.float32)
    w = w.at[0:16, 0:input_dim].set(params["W1"].T.astype(jnp.float32))
    w = w.at[16:48, 0:16].set(params["W2"].T.astype(jnp.float32))
    w = w.at[48:56, 0:32].set(params["W3"].T.astype(jnp.float32))
    w = w.at[56:57, 0:8].set(params["W4"].T.astype(jnp.float32))
    b = jnp.zeros((64, 1), jnp.float32)
    b = b.at[0:16, :].set(params["b1"].T.astype(jnp.float32))
    b = b.at[16:48, :].set(params["b2"].T.astype(jnp.float32))
    b = b.at[48:56, :].set(params["b3"].T.astype(jnp.float32))
    b = b.at[56:57, :].set(params["b4"].T.astype(jnp.float32))
    return w, b


def agenet_forward(x, params, *, tb=8192):
    """x: (B, input_dim) float32 or bfloat16. params: W1..W4 (in,out), b1..b4 (1,out)."""
    B, D = x.shape
    w_slab, b_slab = _pack_params(params, D)
    C = w_slab.shape[1]

    # ---- batch-tile selection (lane axis of the activations) ----
    #  * multiple of 128 lanes
    #  * x double-buffer <= ~12 MiB -> safe under v5e's 16 MiB scoped-VMEM default and
    #    v7x's 32 MiB scoped / 64 MiB physical VMEM
    #  * keep >= 2 grid steps when B allows, so ("parallel",) can feed both v7x TCs
    bytes_per_row = max(D * x.dtype.itemsize, 1)
    vmem_cap = max(128, (6 * 1024 * 1024) // bytes_per_row)
    tb = min(int(tb), 16384, vmem_cap, max(pl.cdiv(B, 2), 128))
    tb = _round_up(max(tb, 128), 128)
    grid = (pl.cdiv(B, tb),)

    flops = 2 * B * (D * 16 + 16 * 32 + 32 * 8 + 8 * 1)
    bytes_accessed = int(B * D * x.dtype.itemsize + 4 * B
                         + 4 * (w_slab.size + b_slab.size))

    out = pl.pallas_call(
        functools.partial(agenet_kernel, input_dim=D),
        out_shape=jax.ShapeDtypeStruct((1, B), jnp.float32),
        grid=grid,
        in_specs=[
            pl.BlockSpec((tb, D), lambda i: (i, 0)),        # x streamed in natural layout
            pl.BlockSpec((64, C), lambda i: (0, 0)),        # resident weight slab
            pl.BlockSpec((64, 1), lambda i: (0, 0)),        # resident bias slab
        ],
        out_specs=pl.BlockSpec((1, tb), lambda i: (0, i)),  # lane-dense output tile
        compiler_params=pltpu.CompilerParams(
            dimension_semantics=("parallel",)),
        cost_estimate=pl.CostEstimate(
            flops=flops, transcendentals=0, bytes_accessed=bytes_accessed),
    )(x, w_slab, b_slab)

    # (1, B) -> (B, 1): identical row-major layout, so this is a free reshape.
    return out.reshape(B, 1)


def init_params(key, input_dim):
    """Deterministic synthetic initialization matching nn.Linear shapes."""
    dims = [(input_dim, 16), (16, 32), (32, 8), (8, 1)]
    params = {}
    for i, (din, dout) in enumerate(dims, start=1):
        key, kw, kb = jax.random.split(key, 3)
        bound = 1.0 / jnp.sqrt(din)
        # Stored (in, out) => y = x @ W + b (equivalent to PyTorch x @ W.T, W:(out,in)).
        params[f"W{i}"] = jax.random.uniform(kw, (din, dout), jnp.float32, -bound, bound)
        params[f"b{i}"] = jax.random.uniform(kb, (1, dout), jnp.float32, -bound, bound)
    return params


def agenet_ref(x, params):
    h = jnp.maximum(x @ params["W1"] + params["b1"], 0.0)
    h = jnp.maximum(h @ params["W2"] + params["b2"], 0.0)
    h = jnp.maximum(h @ params["W3"] + params["b3"], 0.0)
    return h @ params["W4"] + params["b4"]


if __name__ == "__main__":
    key = jax.random.PRNGKey(0)
    key, kx, kp = jax.random.split(key, 3)

    B, input_dim = 512, 32   # small demo; tb logic picks 256 -> 2 pipelined grid steps
    x = jax.random.normal(kx, (B, input_dim), jnp.float32)
    params = init_params(kp, input_dim)

    out = jax.block_until_ready(agenet_forward(x, params))
    ref = agenet_ref(x, params)
    assert out.shape == (B, 1)
    assert jnp.allclose(out, ref, atol=1e-4, rtol=1e-4), "f32 mismatch vs JAX reference"

    # Ragged batch (not a multiple of the 128-lane tile) exercises the partial-block path.
    x_small = jax.random.normal(kx, (37, input_dim), jnp.float32)
    out_small = jax.block_until_ready(agenet_forward(x_small, params))
    assert out_small.shape == (37, 1)
    assert jnp.allclose(out_small, agenet_ref(x_small, params), atol=1e-4, rtol=1e-4)

    # bf16 streaming of x (halves the HBM-bound traffic); accumulation stays f32.
    x_bf16 = x.astype(jnp.bfloat16)
    out_bf16 = jax.block_until_ready(agenet_forward(x_bf16, params))
    ref_bf16 = agenet_ref(x_bf16.astype(jnp.float32), params)
    assert jnp.allclose(out_bf16, ref_bf16, atol=1e-4, rtol=1e-4)

    print("KERNEL_OK")
</pallas_src>

<mosaic_0001>
module attributes {stable_mosaic.version = 11 : i64} {
  func.func @agenet_kernel(%arg0: i32, %arg1: memref<256x32xf32, #tpu.memory_space<vmem>>, %arg2: memref<64x128xf32, #tpu.memory_space<vmem>>, %arg3: memref<64x1xf32, #tpu.memory_space<vmem>>, %arg4: memref<1x256xf32, #tpu.memory_space<vmem>>) attributes {dimension_semantics = [#tpu.dimension_semantics<parallel>], iteration_bounds = array<i64: 2>, scalar_prefetch = 0 : i64, scratch_operands = 0 : i64, tpu.core_type = #tpu.core_type<tc>, window_params = [{transform_indices = @transform_0, window_bounds = array<i64: 256, 32>}, {pipeline_mode = #tpu.pipeline_mode<synchronous>, transform_indices = @transform_1, window_bounds = array<i64: 64, 128>}, {pipeline_mode = #tpu.pipeline_mode<synchronous>, transform_indices = @transform_2, window_bounds = array<i64: 64, 1>}, {transform_indices = @transform_3, window_bounds = array<i64: 1, 256>}]} {
    %c0 = arith.constant 0 : index
    %c0_0 = arith.constant 0 : index
    %0 = vector.load %arg1[%c0, %c0_0] : memref<256x32xf32, #tpu.memory_space<vmem>>, vector<256x32xf32>
    %c0_1 = arith.constant 0 : index
    %c0_2 = arith.constant 0 : index
    %1 = vector.load %arg2[%c0_1, %c0_2] : memref<64x128xf32, #tpu.memory_space<vmem>>, vector<16x32xf32>
    %c16 = arith.constant 16 : index
    %c0_3 = arith.constant 0 : index
    %2 = vector.load %arg2[%c16, %c0_3] : memref<64x128xf32, #tpu.memory_space<vmem>>, vector<32x16xf32>
    %c48 = arith.constant 48 : index
    %c0_4 = arith.constant 0 : index
    %3 = vector.load %arg2[%c48, %c0_4] : memref<64x128xf32, #tpu.memory_space<vmem>>, vector<8x32xf32>
    %c56 = arith.constant 56 : index
    %c0_5 = arith.constant 0 : index
    %4 = vector.load %arg2[%c56, %c0_5] : memref<64x128xf32, #tpu.memory_space<vmem>>, vector<1x8xf32>
    %c0_6 = arith.constant 0 : index
    %c0_7 = arith.constant 0 : index
    %5 = vector.load %arg3[%c0_6, %c0_7] : memref<64x1xf32, #tpu.memory_space<vmem>>, vector<16x1xf32>
    %c16_8 = arith.constant 16 : index
    %c0_9 = arith.constant 0 : index
    %6 = vector.load %arg3[%c16_8, %c0_9] : memref<64x1xf32, #tpu.memory_space<vmem>>, vector<32x1xf32>
    %c48_10 = arith.constant 48 : index
    %c0_11 = arith.constant 0 : index
    %7 = vector.load %arg3[%c48_10, %c0_11] : memref<64x1xf32, #tpu.memory_space<vmem>>, vector<8x1xf32>
    %c56_12 = arith.constant 56 : index
    %c0_13 = arith.constant 0 : index
    %8 = vector.load %arg3[%c56_12, %c0_13] : memref<64x1xf32, #tpu.memory_space<vmem>>, vector<1x1xf32>
    %cst = arith.constant dense<0.000000e+00> : vector<16x256xf32>
    %9 = tpu.matmul %1, %0, %cst {dimension_numbers = #tpu.dot_dimension_numbers<[1], [1], [0], [0], [0, 0, 1, 0], [], []>} : vector<16x32xf32>, vector<256x32xf32>, vector<16x256xf32> -> vector<16x256xf32>
    %10 = vector.broadcast %5 : vector<16x1xf32> to vector<16x256xf32>
    %11 = arith.addf %9, %10 : vector<16x256xf32>
    %cst_14 = arith.constant 0.000000e+00 : f32
    %12 = vector.broadcast %cst_14 : f32 to vector<16x256xf32>
    %13 = arith.maximumf %11, %12 : vector<16x256xf32>
    %cst_15 = arith.constant dense<0.000000e+00> : vector<32x256xf32>
    %14 = tpu.matmul %2, %13, %cst_15 {dimension_numbers = #tpu.dot_dimension_numbers<[1], [0], [0], [1], [0, 0, 1, 1], [], []>} : vector<32x16xf32>, vector<16x256xf32>, vector<32x256xf32> -> vector<32x256xf32>
    %15 = vector.broadcast %6 : vector<32x1xf32> to vector<32x256xf32>
    %16 = arith.addf %14, %15 : vector<32x256xf32>
    %cst_16 = arith.constant 0.000000e+00 : f32
    %17 = vector.broadcast %cst_16 : f32 to vector<32x256xf32>
    %18 = arith.maximumf %16, %17 : vector<32x256xf32>
    %cst_17 = arith.constant dense<0.000000e+00> : vector<8x256xf32>
    %19 = tpu.matmul %3, %18, %cst_17 {dimension_numbers = #tpu.dot_dimension_numbers<[1], [0], [0], [1], [0, 0, 1, 1], [], []>} : vector<8x32xf32>, vector<32x256xf32>, vector<8x256xf32> -> vector<8x256xf32>
    %20 = vector.broadcast %7 : vector<8x1xf32> to vector<8x256xf32>
    %21 = arith.addf %19, %20 : vector<8x256xf32>
    %cst_18 = arith.constant 0.000000e+00 : f32
    %22 = vector.broadcast %cst_18 : f32 to vector<8x256xf32>
    %23 = arith.maximumf %21, %22 : vector<8x256xf32>
    %cst_19 = arith.constant dense<0.000000e+00> : vector<1x256xf32>
    %24 = tpu.matmul %4, %23, %cst_19 {dimension_numbers = #tpu.dot_dimension_numbers<[1], [0], [0], [1], [0, 0, 1, 1], [], []>} : vector<1x8xf32>, vector<8x256xf32>, vector<1x256xf32> -> vector<1x256xf32>
    %25 = vector.broadcast %8 : vector<1x1xf32> to vector<1x256xf32>
    %26 = arith.addf %24, %25 : vector<1x256xf32>
    %c0_20 = arith.constant 0 : index
    %c0_21 = arith.constant 0 : index
    %27 = vector.load %arg4[%c0_20, %c0_21] : memref<1x256xf32, #tpu.memory_space<vmem>>, vector<1x256xf32>
    tpu.vector_store %arg4[%c0_20, %c0_21], %26 {strides = array<i32>} : memref<1x256xf32, #tpu.memory_space<vmem>>, vector<1x256xf32>,
    return
  }
  func.func @transform_0(%arg0: i32) -> (i32, i32) {
    %c0_i32 = arith.constant 0 : i32
    %c0_i32_0 = arith.constant 0 : i32
    return %arg0, %c0_i32 : i32, i32
  }
  func.func @transform_1(%arg0: i32) -> (i32, i32) {
    %c0_i32 = arith.constant 0 : i32
    %c0_i32_0 = arith.constant 0 : i32
    %c0_i32_1 = arith.constant 0 : i32
    return %c0_i32, %c0_i32_0 : i32, i32
  }
  func.func @transform_2(%arg0: i32) -> (i32, i32) {
    %c0_i32 = arith.constant 0 : i32
    %c0_i32_0 = arith.constant 0 : i32
    %c0_i32_1 = arith.constant 0 : i32
    return %c0_i32, %c0_i32_0 : i32, i32
  }
  func.func @transform_3(%arg0: i32) -> (i32, i32) {
    %c0_i32 = arith.constant 0 : i32
    %c0_i32_0 = arith.constant 0 : i32
    return %c0_i32, %arg0 : i32, i32
  }
}

</mosaic_0001>

<bundles_post_ra>
// kernel: tpu_custom_call.1
= control target key start
LH: loop header
LB: loop body
LE: loop exit
PB: predicated region body
PF: predicated region fallthrough
CT: control target
= control target key end

     0   :  { %8 = vsyncpa [#allocation3], 0  ;;  %s1317_s0 = inlined_call_operand.vmem [shape: f32[512,32], index: 0, kind: input, shape index: {}]   ;;  %s1318_s1 = inlined_call_operand.vmem [shape: f32[64,128], index: 1, kind: input, shape index: {}]   ;;  %s1319_s2 = inlined_call_operand.vmem [shape: f32[64,1], index: 2, kind: input, shape index: {}]   ;;  %s1320_s3 = inlined_call_operand.hbm [shape: f32[1,512], index: 3, kind: output, shape index: {}]  }
   0x1   :  { %10 = vsyncpa [#allocation3 + $0x1], 0  ;;  %s1083_s12 = smov 0   ;;  %s1085_s13 = smov 0  }
   0x2   :  { %s1087_s14 = smov 0   ;;  %s1089_s15 = smov 0  }
   0x3 LB: > { %s801_s16 = sadd.s32 4294967295, %s1057_s15   ;;  %s802_s17 = sadd.s32 4294967294, %s1057_s15   ;;  %s1057_s15 = sphi %s1089_s15, %s1328_s15   ;;  %s1053_s14 = sphi %s1087_s14, %s1327_s14   ;;  %s1049_s13 = sphi %s1085_s13, %s1326_s13   ;;  %s1045_s12 = sphi %s1083_s12, %s1325_s12  }
   0x4   : > { %s1106_s18 = sadd.s32 1, %s1057_s15   ;;  %s91_s19 = sadd.s32 1, %s1053_s14 }
   0x5   : > { %s88_s20 = ssub.s32 %s1057_s15, %s1106_s18  ;;  %p101_p0 = scmp.ne.s32.totalorder %s1053_s14, %s1049_s13 }
   0x6   : > { %p89_p1 = scmp.eq.s32.totalorder %s88_s20, 0  ;;  %p102_p2 = scmp.eq.s32.totalorder %s801_s16, 1 }
   0x7   : > { %p107_p3 = scmp.ne.s32.totalorder %s1049_s13, %s1045_s12  ;;  %p108_p4 = scmp.eq.s32.totalorder %s802_s17, 1 }
   0x8   : > { %s1116_s21 = scalar_select %p89_p1, %s1053_s14, %s91_s19  }
   0x9   : > { %p1118_p5 = por %p102_p2, %p101_p0  ;;  %p1122_p6 = por %p108_p4, %p107_p3 }
   0xa   : > { %p805_p7 = scmp.ge.s32.totalorder %s1057_s15, 1  ;;  %p141_p8 = scmp.lt.s32.totalorder %s1057_s15, 3 }
   0xc   : > { %p142_p9 = pnand %p805_p7, %p141_p8 }
   0xd   : > { %s1128_s24 = sshll.u32 (!%p142_p9), %s801_s16, 5  ;;  %vm230_vm0 = vcmask (!%p142_p9), 261120   ;;  %v1133_v0 = vld [vmem:[%s1318_s1] sm:$0xff] (!%p142_p9)  ;;  %v1059_v2 = vmov (!%p142_p9), 0   ;;  %v213_v3 = vld [vmem:[%s1319_s2 + $0x8] sm:$0xff] (!%p142_p9)  ;;  %v218_v15 = vld [vmem:[%s1319_s2 + $0x30] sm:$0xff] (!%p142_p9) }
   0xe   : > { %145 = sbr.rel (%p142_p9) target bundleno = 1008 (0x3f0), region = 32  ;;  %v212_v1 = vld [vmem:[%s1319_s2] sm:$0xff] (!%p142_p9)  ;;  %p166_p10 = scmp.lt.s32.totalorder (!%p142_p9), %s1128_s24, 63  ;;  %887 = vmatprep.mubr.msk.f32.mxu0 (!%p142_p9), %vm230_vm0, %v1133_v0  ;;  %993 = vset.pattern.permute.xlu0 (!%p142_p9), %v1059_v2  ;;  %vm1152_vm1 = vmpackc.low (!%p142_p9), %vm230_vm0, %vm230_vm0  ;;  %v205_v55 = vld [vmem:[%s1318_s1 + $0x8] sm:$0xff] (!%p142_p9)  ;;  %v1060_v56 = vmov (!%p142_p9), 0.0   ;;  %vm434_vm2 = vcmask (!%p142_p9), 130048  }
   0xf   : > { %222 = vperm.xlu0 (!%p142_p9), %993, %v212_v1   ;;  %994 = vset.pattern.permute.xlu1 (!%p142_p9), %v1059_v2  ;;  %v216_v5 = vld [vmem:[%s1319_s2 + $0x20] sm:$0xff] (!%p142_p9)  ;;  %v214_v57 = vld [vmem:[%s1319_s2 + $0x10] sm:$0xff] (!%p142_p9)  ;;  %v215_v58 = vld [vmem:[%s1319_s2 + $0x18] sm:$0xff] (!%p142_p9)  ;;  %vm630_vm3 = vcmask (!%p142_p9), 64512   ;;  %s162_s26 = sand.u32 (!%p142_p9), 1, %s1049_s13  }
  0x10   : > { %511 = vmatprep.mubr.f32.mxu1 (!%p142_p9), %v1060_v56  ;;  %416 = vperm.xlu1 (!%p142_p9), %994, %v214_v57   ;;  %v217_v59 = vld [vmem:[%s1319_s2 + $0x28] sm:$0xff] (!%p142_p9)  ;;  %v219_v60 = vld [vmem:[%s1319_s2 + $0x38] sm:$0x1] (!%p142_p9)  ;;  %s806_s27 = sshll.u32 (!%p142_p9), %s162_s26, 1  ;;  %s729_s6 = scalar_lea.sflag (!%p142_p9), [#allocation3], %s162_s26 }
  0x11   : > { %s164_s28 = scalar_lea.vmem (!%p142_p9), [#allocation2], %s806_s27 }
  0x13   : > { %227 = vperm.xlu0 (!%p142_p9), %993, %v213_v3  }
  0x14   : > { %421 = vperm.xlu1 (!%p142_p9), %994, %v215_v58   ;;  %v211_v58 = vld [vmem:[%s1318_s1 + $0x38] sm:$0x1] (!%p142_p9) }
  0x15   : > { %s167_s29 = scalar_select %p166_p10, %s1128_s24, 63 }
  0x17   : > { %s808_s5 = sshll.u32 %s167_s29, 3  ;;  %426 = vperm.xlu0 %993, %v216_v5   ;;  %s743_s29 = sshll.u32 %s164_s28, 4  ;;  %s1277_s29 = int_to_ptr.vmem [resolvable:$true] %s743_s29 }
  0x18   : > { %s1148_s8 = scalar_lea.vmem %s1317_s0, %s808_s5  ;;  %431 = vperm.xlu1 %994, %v217_v59   ;;  %v1061_v59 = vmov 1966171168   ;;  %s1275_s5 = scalar_lea.hbm %s1320_s3, %s1128_s24 }
  0x19   : > { %v188_v6 = vld [vmem:[%s1148_s8 + $0x80] sm:$0xff]  ;;  %v189_v7 = vld [vmem:[%s1148_s8 + $0x88] sm:$0xff]  ;;  %v190_v11 = vld [vmem:[%s1148_s8 + $0x90] sm:$0xff]  ;;  %s995_s7 = scalar_lea.vmem %s1277_s29, 32 }
  0x1a   : > { %v172_v8 = vld [vmem:[%s1148_s8] sm:$0xff]  ;;  %v891_v9 = vpack.c.bf16 %v189_v7, %v188_v6  ;;  %v173_v10 = vld [vmem:[%s1148_s8 + $0x8] sm:$0xff]  ;;  %v191_v12 = vld [vmem:[%s1148_s8 + $0x98] sm:$0xff]  ;;  %p996_p11 = scmp.ne.s32.totalorder %s1277_s29, %s995_s7 }
  0x1b   : > { %v894_v13 = vpack.c.bf16 %v173_v10, %v172_v8  ;;  %v897_v14 = vpack.c.bf16 %v191_v12, %v190_v11  ;;  %v174_v16 = vld [vmem:[%s1148_s8 + $0x10] sm:$0xff]  ;;  %v175_v17 = vld [vmem:[%s1148_s8 + $0x18] sm:$0xff]  ;;  %v192_v18 = vld [vmem:[%s1148_s8 + $0xa0] sm:$0xff]  ;;  %546 = vperm.xlu0 %993, %v218_v15  }
  0x1c   : > { %893 = vmatprep.subr.msk.bf16.mxu0 %vm1152_vm1, %v891_v9  ;;  %v193_v19 = vld [vmem:[%s1148_s8 + $0xa8] sm:$0xff]  ;;  %v900_v20 = vpack.c.bf16 %v175_v17, %v174_v16  ;;  %v176_v22 = vld [vmem:[%s1148_s8 + $0x20] sm:$0xff]  ;;  %v194_v24 = vld [vmem:[%s1148_s8 + $0xb0] sm:$0xff]  ;;  %627 = vperm.xlu1 %994, %v219_v60   ;;  %v709_v60 = vunpack.c.l.s4 %v1061_v59  ;;  %p997_p12 = pnand %p996_p11, %p1118_p5 }
  0x1d   : > { %896 = vmatpush3.bf16.xpose.msk.msra.mxu0 %vm1152_vm1, %v894_v13  ;;  %v903_v21 = vpack.c.bf16 %v193_v19, %v192_v18  ;;  %v177_v23 = vld [vmem:[%s1148_s8 + $0x28] sm:$0xff]  ;;  %v195_v25 = vld [vmem:[%s1148_s8 + $0xb8] sm:$0xff]  ;;  %v178_v28 = vld [vmem:[%s1148_s8 + $0x30] sm:$0xff] }
  0x1e   : > { %899 = vmatprep.subr.msk.bf16.mxu0 %vm1152_vm1, %v897_v14  ;;  %v906_v26 = vpack.c.bf16 %v177_v23, %v176_v22  ;;  %v909_v27 = vpack.c.bf16 %v195_v25, %v194_v24  ;;  %v179_v29 = vld [vmem:[%s1148_s8 + $0x38] sm:$0xff]  ;;  %v196_v30 = vld [vmem:[%s1148_s8 + $0xc0] sm:$0xff]  ;;  %v197_v31 = vld [vmem:[%s1148_s8 + $0xc8] sm:$0xff]  ;;  %p998_p13 = pneg %p997_p12 }
  0x1f   : > { %v912_v32 = vpack.c.bf16 %v179_v29, %v178_v28  ;;  %v915_v33 = vpack.c.bf16 %v197_v31, %v196_v30  ;;  %v180_v34 = vld [vmem:[%s1148_s8 + $0x40] sm:$0xff]  ;;  %v181_v35 = vld [vmem:[%s1148_s8 + $0x48] sm:$0xff]  ;;  %v198_v36 = vld [vmem:[%s1148_s8 + $0xd0] sm:$0xff] }
  0x20   : > { %v199_v37 = vld [vmem:[%s1148_s8 + $0xd8] sm:$0xff]  ;;  %v918_v38 = vpack.c.bf16 %v181_v35, %v180_v34  ;;  %v182_v40 = vld [vmem:[%s1148_s8 + $0x50] sm:$0xff]  ;;  %v200_v42 = vld [vmem:[%s1148_s8 + $0xe0] sm:$0xff] }
  0x21   : > { %v921_v39 = vpack.c.bf16 %v199_v37, %v198_v36  ;;  %v183_v41 = vld [vmem:[%s1148_s8 + $0x58] sm:$0xff]  ;;  %v201_v43 = vld [vmem:[%s1148_s8 + $0xe8] sm:$0xff]  ;;  %v184_v46 = vld [vmem:[%s1148_s8 + $0x60] sm:$0xff] }
  0x22   : > { %v924_v44 = vpack.c.bf16 %v183_v41, %v182_v40  ;;  %v927_v45 = vpack.c.bf16 %v201_v43, %v200_v42  ;;  %v185_v47 = vld [vmem:[%s1148_s8 + $0x68] sm:$0xff]  ;;  %v202_v48 = vld [vmem:[%s1148_s8 + $0xf0] sm:$0xff]  ;;  %v203_v49 = vld [vmem:[%s1148_s8 + $0xf8] sm:$0xff] }
  0x23   : > { %v930_v50 = vpack.c.bf16 %v185_v47, %v184_v46  ;;  %v933_v51 = vpack.c.bf16 %v203_v49, %v202_v48  ;;  %v186_v52 = vld [vmem:[%s1148_s8 + $0x70] sm:$0xff]  ;;  %v187_v53 = vld [vmem:[%s1148_s8 + $0x78] sm:$0xff]  ;;  %v208_v15 = vld [vmem:[%s1318_s1 + $0x20] sm:$0xff]  ;;  %s1062_s8 = smov [#allocation2]  }
  0x24   : > { %v936_v54 = vpack.c.bf16 %v187_v53, %v186_v52  ;;  %v206_v13 = vld [vmem:[%s1318_s1 + $0x10] sm:$0xff]  ;;  %v207_v14 = vld [vmem:[%s1318_s1 + $0x18] sm:$0xff]  ;;  %v209_v16 = vld [vmem:[%s1318_s1 + $0x28] sm:$0xff]  ;;  %s999_s9 = sshll.u32 %s1062_s8, 4  ;;  %s1000_s9 = int_to_ptr.vmem [resolvable:$false] %s999_s9 }
  0x25   : > { %902 = vmatpush3.bf16.xpose.msk.msra.mxu0 %vm1152_vm1, %v900_v20  ;;  %v210_v49 = vld [vmem:[%s1318_s1 + $0x30] sm:$0xff]  ;;  %s1001_s10 = scalar_lea.vmem %s1000_s9, 64  ;;  %p1002_p0 = scmp.lt.s32.totalorder %s1277_s29, %s1000_s9 }
  0x26   : > { %905 = vmatprep.subr.msk.bf16.mxu0 %vm1152_vm1, %v903_v21  ;;  %p1003_p1 = scmp.lt.s32.totalorder %s1001_s10, %s995_s7 }
  0x28   : > { %p1004_p2 = por %p1003_p1, %p1002_p0 }
  0x2a   : > { %p1005_p3 = pnand %p1004_p2, %p998_p13 }
  0x2d   : > { %908 = vmatpush3.bf16.xpose.msk.msra.mxu0 %vm1152_vm1, %v906_v26 }
  0x2e   : > { %911 = vmatprep.subr.msk.bf16.mxu0 %vm1152_vm1, %v909_v27 }
  0x35   : > { %914 = vmatpush3.bf16.xpose.msk.msra.mxu0 %vm1152_vm1, %v912_v32 }
  0x36   : > { %917 = vmatprep.subr.msk.bf16.mxu0 %vm1152_vm1, %v915_v33 }
  0x3d   : > { %920 = vmatpush3.bf16.xpose.msk.msra.mxu0 %vm1152_vm1, %v918_v38 }
  0x3e   : > { %923 = vmatprep.subr.msk.bf16.mxu0 %vm1152_vm1, %v921_v39 }
  0x45   : > { %926 = vmatpush3.bf16.xpose.msk.msra.mxu0 %vm1152_vm1, %v924_v44 }
  0x46   : > { %929 = vmatprep.subr.msk.bf16.mxu0 %vm1152_vm1, %v927_v45 }
  0x4d   : > { %932 = vmatpush3.bf16.xpose.msk.msra.mxu0 %vm1152_vm1, %v930_v50 }
  0x4e   : > { %935 = vmatprep.subr.msk.bf16.mxu0 %vm1152_vm1, %v933_v51 }
  0x55   : > { %938 = vmatpush3.bf16.xpose.msk.msra.mxu0 %vm1152_vm1, %v936_v54 }
  0x5c   : > { %888 = vmatmul.mubr.msk.f32.vlgmr.msra.gmra.mrb[0].mxu0 %vm230_vm0, %v1133_v0 }
  0x5d   : > { %889 = vmatprep.mubr.msk.f32.mxu0 %vm230_vm0, %v205_v55 }
  0x60   : > { %890 = vmatmul.mubr.msk.f32.gmra.mrb[2].mxu0 %vm230_vm0, %v205_v55 }
  0x8e   : > { %v223_v61 = vpop.permute.xlu0 %222 }
  0x8f   : > { %v417_v17 = vpop.permute.xlu1 %416 }
  0x92   : > { %v228_v1 = vpop.permute.xlu0 %227 }
  0x93   : > { %v422_v21 = vpop.permute.xlu1 %421 }
  0x96   : > { %v427_v34 = vpop.permute.xlu0 %426 }
  0x97   : > { %v432_v37 = vpop.permute.xlu1 %431 }
  0x9a   : > { %v547_v50 = vpop.permute.xlu0 %546 }
 0x12f   : > { %v399_v62 = vpop.f32.mrb[0].mxu0 }
 0x130   : > { %v401_v63 = vpop.f32.mrb[1].mxu0  ;;  %v400_v0 = vadd.f32 %v399_v62, %v223_v61 }
 0x131   : > { %v402_v2 = vadd.f32 %v401_v63, %v223_v61  ;;  %v711_v61 = vlaneseq  ;;  %v628_v63 = vpop.permute.xlu1 %627 }
 0x132   : > { %v410_v7 = vmax.f32 %v400_v0, 0.0 }
 0x133   : > { %v405_v3 = vpop.f32.mrb[2].mxu0  ;;  %v411_v9 = vmax.f32 %v402_v2, 0.0  ;;  %v712_v62 = vshrl.u32 %v711_v61, 7  ;;  %vm725_vm4 = vcmp.lt.s32.totalorder %v711_v61, 256 }
 0x134   : > { %v406_v4 = vadd.f32 %v405_v3, %v228_v1  ;;  %v407_v5 = vpop.f32.mrb[3].mxu0 }
 0x135   : > { %v408_v6 = vadd.f32 %v407_v5, %v228_v1 }
 0x136   : > { %v412_v8 = vmax.f32 %v406_v4, 0.0 }
 0x137   : > { %v413_v10 = vmax.f32 %v408_v6, 0.0 }
 0x138   : > { %v941_v11 = vpack.c.bf16 %v412_v8, %v410_v7 }
 0x139   : > { %v939_v12 = vpack.c.bf16 %v413_v10, %v411_v9 }
 0x13b   : > { %940 = vmatprep.subr.bf16.mxu1 %v939_v12 }
 0x13c   : > { %942 = vmatpush1.bf16.msra.mxu1 %v941_v11 }
 0x13f   : > { %843 = vmatmul.mubr.msk.f32.vlgmr.msra.gmra.mrb[0].mxu1 %vm434_vm2, %v206_v13 }
 0x140   : > { %517 = vmatprep.mubr.f32.mxu1 %v1060_v56 }
 0x143   : > { %844 = vmatmul.mubr.msk.f32.gmra.mrb[2].mxu1 %vm434_vm2, %v207_v14 }
 0x144   : > { %523 = vmatprep.mubr.f32.mxu1 %v1060_v56 }
 0x147   : > { %845 = vmatmul.mubr.msk.f32.gmra.mrb[4].mxu1 %vm434_vm2, %v208_v15 }
 0x148   : > { %529 = vmatprep.mubr.f32.mxu1 %v1060_v56 }
 0x14b   : > { %846 = vmatmul.mubr.msk.f32.gmra.mrb[6].mxu1 %vm434_vm2, %v209_v16 }
 0x14c   : > { %616 = vmatprep.mubr.f32.mxu1 %v1060_v56 }
 0x212   : > { %v513_v18 = vpop.f32.mrb[0].mxu1 }
 0x213   : > { %v515_v19 = vpop.f32.mrb[1].mxu1  ;;  %v514_v20 = vadd.f32 %v513_v18, %v417_v17 }
 0x214   : > { %v516_v22 = vadd.f32 %v515_v19, %v417_v17 }
 0x215   : > { %v536_v27 = vmax.f32 %v514_v20, 0.0 }
 0x216   : > { %v519_v23 = vpop.f32.mrb[2].mxu1  ;;  %v537_v29 = vmax.f32 %v516_v22, 0.0 }
 0x217   : > { %v520_v24 = vadd.f32 %v519_v23, %v422_v21  ;;  %v521_v25 = vpop.f32.mrb[3].mxu1 }
 0x218   : > { %v522_v26 = vadd.f32 %v521_v25, %v422_v21 }
 0x219   : > { %v538_v28 = vmax.f32 %v520_v24, 0.0 }
 0x21a   : > { %v539_v30 = vmax.f32 %v522_v26, 0.0  ;;  %v525_v31 = vpop.f32.mrb[4].mxu1 }
 0x21b   : > { %v945_v32 = vpack.c.bf16 %v538_v28, %v536_v27  ;;  %v527_v33 = vpop.f32.mrb[5].mxu1  ;;  %v526_v36 = vadd.f32 %v525_v31, %v427_v34 }
 0x21c   : > { %v943_v35 = vpack.c.bf16 %v539_v30, %v537_v29  ;;  %v528_v38 = vadd.f32 %v527_v33, %v427_v34 }
 0x21d   : > { %v540_v43 = vmax.f32 %v526_v36, 0.0 }
 0x21e   : > { %v531_v39 = vpop.f32.mrb[6].mxu1  ;;  %944 = vmatprep.subr.bf16.mxu1 %v943_v35  ;;  %v541_v45 = vmax.f32 %v528_v38, 0.0 }
 0x21f   : > { %v532_v40 = vadd.f32 %v531_v39, %v432_v37  ;;  %v533_v41 = vpop.f32.mrb[7].mxu1  ;;  %946 = vmatpush1.bf16.msra.mxu1 %v945_v32 }
 0x220   : > { %v534_v42 = vadd.f32 %v533_v41, %v432_v37 }
 0x221   : > { %v542_v44 = vmax.f32 %v532_v40, 0.0 }
 0x222   : > { %v543_v46 = vmax.f32 %v534_v42, 0.0 }
 0x223   : > { %v949_v47 = vpack.c.bf16 %v542_v44, %v540_v43 }
 0x224   : > { %v947_v48 = vpack.c.bf16 %v543_v46, %v541_v45 }
 0x226   : > { %948 = vmatprep.subr.bf16.mxu1 %v947_v48 }
 0x227   : > { %950 = vmatpush1.bf16.msra.mxu1 %v949_v47 }
 0x22a   : > { %847 = vmatmul.mubr.msk.f32.vlgmr.msra.gmra.mrb[8].mxu1 %vm230_vm0, %v210_v49 }
 0x22b   : > { %698 = vmatprep.mubr.f32.mxu1 %v1060_v56  ;;  %v710_v56 = vunpack.c.0.s8 %v709_v60 }
 0x22d   : > { %v713_v4 = vsub.s32 %v710_v56, %v712_v62 }
 0x2fd   : > { %v618_v51 = vpop.f32.mrb[8].mxu1 }
 0x2fe   : > { %v619_v52 = vadd.f32 %v618_v51, %v547_v50  ;;  %v620_v53 = vpop.f32.mrb[9].mxu1 }
 0x2ff   : > { %v621_v54 = vadd.f32 %v620_v53, %v547_v50 }
 0x300   : > { %v623_v57 = vmax.f32 %v619_v52, 0.0 }
 0x301   : > { %v624_v55 = vmax.f32 %v621_v54, 0.0 }
 0x303   : > { %634 = vmatprep.subr.mxu1 %v624_v55 }
 0x304   : > { %635 = vmatpush1.msra.mxu1 %v623_v57 }
 0x305   : > { %848 = vmatmul.mubr.msk.f32.vlgmr.msra.gmra.mrb[10].mxu1 %vm630_vm3, %v211_v58 }
 0x3d8   : > { %v700_v0 = vpop.f32.mrb[10].mxu1 }
 0x3d9   : > { %v701_v1 = vadd.f32 %v700_v0, %v628_v63  ;;  %v702_v2 = vpop.f32.mrb[11].mxu1 }
 0x3da   : > { %v703_v3 = vadd.f32 %v702_v2, %v628_v63 }
 0x3dc   : > { %v707_v5 = vcombine.low %v701_v1, %v703_v3 }
 0x3de   : > { %v714_v6 = vrot.slane %v707_v5, %v713_v4 }
 0x3e0   : > { %v721_v7 = vrot.slane %v714_v6, %v713_v4 }
 0x3e2   : > { %727 = vst.msk [vmem:[%s164_s28] sm:$0x3] %vm725_vm4, %v721_v7 }
 0x3e3   : > { %1008 = shalt.err (!%p1005_p3)
}
 0x3e4   : > { %s1009_s24 = scalar_lea.hbm %s1275_s5, 32  ;;  %s1013_s17 = scalar_lea.hbm %s1320_s3, 64 }
 0x3e5   : > { %p1010_p4 = scmp.ne.s32.totalorder %s1275_s5, %s1009_s24  ;;  %p1014_p9 = scmp.lt.u32.totalorder %s1275_s5, %s1320_s3 }
 0x3e6   : > { %p1015_p10 = scmp.lt.u32.totalorder %s1013_s17, %s1009_s24  ;;  %p1017_p12 = scmp.lt.u32.totalorder %s1009_s24, %s1275_s5 }
 0x3e7   : > { %p1011_p7 = pnand %p1010_p4, %p1118_p5 }
 0x3e8   : > { %p1016_p11 = por %p1015_p10, %p1014_p9 }
 0x3e9   : > { %p1012_p8 = pneg %p1011_p7 }
 0x3ea   : > { %p1018_p13 = por %p1017_p12, %p1016_p11 }
 0x3ec   : > { %p1019_p0 = pnand %p1018_p13, %p1012_p8 }
 0x3ee   : > { %1022 = shalt.err (!%p1019_p0)
}
 0x3ef   : > { %951 = dma.vmem_to_hbm [thread:$0]  (%p1118_p5), %s1277_s29, 32, %s1275_s5, %s729_s6  }
 0x3f0 PF: > { %p957_p1 = scmp.ge.s32.totalorder %s1057_s15, 2  ;;  %s755_s25 = sand.u32 1, %s1045_s12  }
 0x3f1   : > { %s756_s26 = scalar_lea.sflag [#allocation3], %s755_s25 }
 0x3f2   : > { %p954_p2 = pnand %p957_p1, %p1122_p6 }
 0x3f4   : > { %1040 = dma.done.wait (!%p954_p2), %s756_s26, 32  }
 0x3f5   : > { %1042 = vsyncadd (!%p954_p2), %s756_s26, 4294967264  ;;  %p13_p3 = scmp.ge.s32.totalorder %s1106_s18, 4   ;;  %s1325_s12 = smov %s1049_s13 }
 0x3f6   : > { %s1326_s13 = smov %s1053_s14  ;;  %s1327_s14 = smov %s1116_s21 }
 0x3f7   : > { %s1328_s15 = smov %s1106_s18  ;;  %15 = sbr.rel (!%p13_p3) target bundleno = 3 (0x3), region = 67 }
 0x3fe   :  { %761 = vsyncpa [#allocation3], 1 }
 0x3ff   :  { %763 = vsyncpa [#allocation3 + $0x1], 1 }

</bundles_post_ra>
